<compile_context>
chip_gen: v5e
topology: v5e:2x2
jax: 0.10.0
libtpu: 0.0.40
codegen_flags: <defaults>
</compile_context>

<pallas_src>
import functools
import math

import numpy as np
import jax
import jax.numpy as jnp
from jax.experimental import pallas as pl
from jax.experimental.pallas import tpu as pltpu

N_FFT = 1024
FS = 30.0
PULSE_BAND = (45.0 / 60.0, 250.0 / 60.0)
WIND_SZ = N_FFT // 256            # = 4
TM_MAX = 256                      # batch-tile upper bound (MXU/step-overhead sweet spot)


def _argmin_band(target_hz: float) -> int:
    """Replicates torch.argmin(|linspace(0, Fs/2, N/2+1) - target|) statically."""
    best_k, best_d = 0, float("inf")
    for k in range(N_FFT // 2 + 1):
        fk = k * FS / N_FFT
        d = abs(fk - target_hz)
        if d < best_d:
            best_d, best_k = d, k
    return best_k


MIN_IDX = _argmin_band(PULSE_BAND[0])   # 26
MAX_IDX = _argmin_band(PULSE_BAND[1])   # 142

# Only bins [MIN_IDX - WIND_SZ, MAX_IDX + WIND_SZ) = [22, 146) are ever read.
# Compute a single 128-lane window of bins [K_OFF, K_OFF + NUM_BINS).
NUM_BINS = 128
K_OFF = 18
assert K_OFF <= MIN_IDX - WIND_SZ and MAX_IDX + WIND_SZ <= K_OFF + NUM_BINS


@functools.lru_cache(maxsize=None)
def _dft_basis_np(n_samp: int) -> np.ndarray:
    """[cos | sin] real-DFT basis for bins [K_OFF, K_OFF+NUM_BINS), with the
    rfft(norm='forward') 1/N scale folded in.  Shape (n_samp, 2*NUM_BINS) f32.
    Cached: built once per n_samp, never per training step."""
    n = np.arange(n_samp, dtype=np.float64)[:, None]
    k = np.arange(K_OFF, K_OFF + NUM_BINS, dtype=np.float64)[None, :]
    ang = (2.0 * np.pi / N_FFT) * n * k
    basis = np.concatenate([np.cos(ang), np.sin(ang)], axis=1) / N_FFT
    return basis.astype(np.float32)


def _round_up(x: int, m: int) -> int:
    return ((x + m - 1) // m) * m


def _choose_tile(n_rows: int, tm_max: int = TM_MAX):
    """Pick (tm, padded_rows).

    Priorities: (1) tiles big enough to amortize the ~0.35 us/grid-step
    overhead, (2) no host-side padding (tm divides n_rows, or a single
    full-extent tile), (3) >= 2 grid steps so the "parallel" axis can be split
    across the two v7x TensorCores."""
    # No-padding candidates: full-extent single tile, or multiple-of-8 divisors.
    cand = []
    if n_rows <= tm_max:
        cand.append(n_rows)
    if n_rows % 8 == 0:
        cand += [d for d in range(8, min(tm_max, n_rows) + 1, 8) if n_rows % d == 0]
    big = [d for d in cand if d >= min(64, n_rows)]
    if big:
        multi = [d for d in big if n_rows // d >= 2]     # >= 2 steps -> megacore
        return (max(multi) if multi else max(big)), n_rows
    # Rare fallback (no good divisor): minimal padding to a multiple-of-8 tile.
    k = -(-n_rows // tm_max)                             # number of grid steps
    tm = _round_up(-(-n_rows // k), 8)
    return tm, tm * k


def _snr_kernel(out_ref, tgt_ref, basis_ref, loss_ref, *,
                min_idx, max_idx, wind_sz, k_off, n_rows):
    tm = out_ref.shape[0]
    nb = basis_ref.shape[1] // 2          # = NUM_BINS

    basis = basis_ref[...]
    # Two MXU matmuls (no concatenate / no copy): windowed real-DFT of the
    # predictions and of the targets, accumulated in f32.
    spec_p = jnp.dot(out_ref[...], basis, preferred_element_type=jnp.float32)
    spec_t = jnp.dot(tgt_ref[...], basis, preferred_element_type=jnp.float32)

    # |rfft|^2 restricted to the window; [:, :nb]/[:, nb:] are 128-lane aligned.
    sq_p = spec_p * spec_p
    sq_t = spec_t * spec_t
    p1 = sq_p[:, :nb] + sq_p[:, nb:]      # outputs' power spectrum
    y2 = sq_t[:, :nb] + sq_t[:, nb:]      # targets' power spectrum

    k_iota = k_off + jax.lax.broadcasted_iota(jnp.int32, (tm, nb), 1)
    band_mask = (k_iota >= min_idx) & (k_iota < max_idx)

    # argmax of Y2 over the pulse band (first occurrence, like torch.argmax)
    neg_inf = jnp.float32(-jnp.inf)
    y2_band = jnp.where(band_mask, y2, neg_inf)
    y2_max = jnp.max(y2_band, axis=1, keepdims=True)
    cand = jnp.where(y2_band == y2_max, k_iota, jnp.int32(k_off + nb))
    ref_idx = jnp.min(cand, axis=1, keepdims=True)                           # (tm, 1)

    # pulse window [ref-w, ref+w); ref >= min_idx > w so lower_lim = ref - w
    pulse_mask = (k_iota >= ref_idx - wind_sz) & (k_iota < ref_idx + wind_sz)
    other_mask = band_mask & jnp.logical_not(pulse_mask)

    zero = jnp.float32(0.0)
    pulse = jnp.sum(jnp.where(pulse_mask, p1, zero), axis=1, keepdims=True)
    other = jnp.sum(jnp.where(other_mask, p1, zero), axis=1, keepdims=True)

    # -10*log10(pulse/(other+eps)) as a difference of logs (same eps placement
    # as the torch reference: eps only on the denominator).
    scale = jnp.float32(-10.0 / math.log(10.0))
    losses = scale * (jnp.log(pulse) - jnp.log(other + jnp.float32(1e-7)))   # (tm, 1)

    # Mask padded rows (only present in the rare padding fallback) BEFORE the
    # host-side sum so sum/N is an exact mean.
    row = pl.program_id(0) * tm + jax.lax.broadcasted_iota(jnp.int32, (tm, 1), 0)
    loss_ref[...] = jnp.where(row < n_rows, losses, zero)


def snr_loss_db_signals(outputs, targets):
    n_samp = outputs.shape[-1]
    out2 = outputs.reshape(-1, n_samp)
    tgt2 = targets.reshape(-1, n_samp)
    if n_samp > N_FFT:                       # torch.fft.rfft(n=N) truncates
        out2, tgt2 = out2[:, :N_FFT], tgt2[:, :N_FFT]
        n_samp = N_FFT

    # Keep narrow signal dtypes narrow (half the HBM DMA, full-rate MXU);
    # anything else runs as f32.  DFT accumulation is always f32.
    narrow = (np.dtype(jnp.bfloat16), np.dtype(jnp.float16), np.dtype(jnp.float32))
    in_dtype = out2.dtype if out2.dtype in narrow else jnp.float32
    out2 = out2.astype(in_dtype)
    tgt2 = tgt2.astype(in_dtype)
    n_rows = out2.shape[0]

    tm, b_pad = _choose_tile(n_rows)
    if b_pad != n_rows:                      # rare fallback only
        pad = ((0, b_pad - n_rows), (0, 0))
        out2 = jnp.pad(out2, pad)
        tgt2 = jnp.pad(tgt2, pad)
    grid = (b_pad // tm,)

    basis = jnp.asarray(_dft_basis_np(n_samp)).astype(in_dtype)   # (T, 2*NUM_BINS)

    kernel = functools.partial(_snr_kernel, min_idx=MIN_IDX, max_idx=MAX_IDX,
                               wind_sz=WIND_SZ, k_off=K_OFF, n_rows=n_rows)

    itemsize = int(np.dtype(in_dtype).itemsize)
    cost = pl.CostEstimate(
        flops=int(4 * b_pad * n_samp * 2 * NUM_BINS + 16 * b_pad * NUM_BINS),
        transcendentals=int(2 * b_pad),
        bytes_accessed=int(2 * b_pad * n_samp * itemsize
                           + n_samp * 2 * NUM_BINS * itemsize
                           + b_pad * 4),
    )

    losses = pl.pallas_call(
        kernel,
        out_shape=jax.ShapeDtypeStruct((b_pad, 1), jnp.float32),
        grid=grid,
        in_specs=[
            pl.BlockSpec((tm, n_samp), lambda i: (i, 0)),            # pred tile
            pl.BlockSpec((tm, n_samp), lambda i: (i, 0)),            # target tile
            pl.BlockSpec((n_samp, 2 * NUM_BINS), lambda i: (0, 0)),  # resident basis
        ],
        out_specs=pl.BlockSpec((tm, 1), lambda i: (i, 0)),
        compiler_params=pltpu.CompilerParams(
            dimension_semantics=("parallel",),
            vmem_limit_bytes=32 * 1024 * 1024),
        cost_estimate=cost,
    )(out2, tgt2, basis)

    # Final mean over the true rows (padded rows, if any, are zeroed in-kernel).
    return jnp.sum(losses) / jnp.float32(n_rows)


if __name__ == "__main__":
    key = jax.random.PRNGKey(0)
    k1, k2 = jax.random.split(key, 2)
    # small shapes consistent with the forward: (batch, clips, seq) -> view(-1, seq)
    B, C, T = 2, 2, 128
    t = jnp.arange(T, dtype=jnp.float32) / FS
    # pulse-like target (~1.5 Hz) + noise; noisier prediction
    hr = 1.5
    base = jnp.sin(2.0 * jnp.pi * hr * t)[None, None, :]
    targets = base + 0.1 * jax.random.normal(k1, (B, C, T), dtype=jnp.float32)
    outputs = base + 0.5 * jax.random.normal(k2, (B, C, T), dtype=jnp.float32)

    loss = snr_loss_db_signals(outputs, targets)
    jax.block_until_ready(loss)
    print("KERNEL_OK")
</pallas_src>

<mosaic_0001>
module attributes {stable_mosaic.version = 11 : i64} {
  func.func @_snr_kernel(%arg0: i32, %arg1: memref<4x128xf32, #tpu.memory_space<vmem>>, %arg2: memref<4x128xf32, #tpu.memory_space<vmem>>, %arg3: memref<128x256xf32, #tpu.memory_space<vmem>>, %arg4: memref<4x1xf32, #tpu.memory_space<vmem>>) attributes {dimension_semantics = [#tpu.dimension_semantics<parallel>], iteration_bounds = array<i64: 1>, scalar_prefetch = 0 : i64, scratch_operands = 0 : i64, tpu.core_type = #tpu.core_type<tc>, window_params = [{transform_indices = @transform_0, window_bounds = array<i64: 4, 128>}, {transform_indices = @transform_1, window_bounds = array<i64: 4, 128>}, {pipeline_mode = #tpu.pipeline_mode<synchronous>, transform_indices = @transform_2, window_bounds = array<i64: 128, 256>}, {transform_indices = @transform_3, window_bounds = array<i64: 4, 1>}]} {
    %c0 = arith.constant 0 : index
    %c0_0 = arith.constant 0 : index
    %0 = vector.load %arg3[%c0, %c0_0] : memref<128x256xf32, #tpu.memory_space<vmem>>, vector<128x256xf32>
    %c0_1 = arith.constant 0 : index
    %c0_2 = arith.constant 0 : index
    %1 = vector.load %arg1[%c0_1, %c0_2] : memref<4x128xf32, #tpu.memory_space<vmem>>, vector<4x128xf32>
    %cst = arith.constant dense<0.000000e+00> : vector<4x256xf32>
    %2 = tpu.matmul %1, %0, %cst {dimension_numbers = #tpu.dot_dimension_numbers<[1], [0], [0], [1], [0, 0, 1, 1], [], []>} : vector<4x128xf32>, vector<128x256xf32>, vector<4x256xf32> -> vector<4x256xf32>
    %c0_3 = arith.constant 0 : index
    %c0_4 = arith.constant 0 : index
    %3 = vector.load %arg2[%c0_3, %c0_4] : memref<4x128xf32, #tpu.memory_space<vmem>>, vector<4x128xf32>
    %cst_5 = arith.constant dense<0.000000e+00> : vector<4x256xf32>
    %4 = tpu.matmul %3, %0, %cst_5 {dimension_numbers = #tpu.dot_dimension_numbers<[1], [0], [0], [1], [0, 0, 1, 1], [], []>} : vector<4x128xf32>, vector<128x256xf32>, vector<4x256xf32> -> vector<4x256xf32>
    %5 = arith.mulf %2, %2 : vector<4x256xf32>
    %6 = arith.mulf %4, %4 : vector<4x256xf32>
    %7 = vector.extract_strided_slice %5 {offsets = [0, 0], sizes = [4, 128], strides = [1, 1]} : vector<4x256xf32> to vector<4x128xf32>
    %8 = vector.extract_strided_slice %5 {offsets = [0, 128], sizes = [4, 128], strides = [1, 1]} : vector<4x256xf32> to vector<4x128xf32>
    %9 = arith.addf %7, %8 : vector<4x128xf32>
    %10 = vector.extract_strided_slice %6 {offsets = [0, 0], sizes = [4, 128], strides = [1, 1]} : vector<4x256xf32> to vector<4x128xf32>
    %11 = vector.extract_strided_slice %6 {offsets = [0, 128], sizes = [4, 128], strides = [1, 1]} : vector<4x256xf32> to vector<4x128xf32>
    %12 = arith.addf %10, %11 : vector<4x128xf32>
    %13 = tpu.iota {dimensions = array<i32: 1>} : vector<4x128xi32>
    %c18_i32 = arith.constant 18 : i32
    %14 = vector.broadcast %c18_i32 : i32 to vector<4x128xi32>
    %15 = arith.addi %14, %13 : vector<4x128xi32>
    %c26_i32 = arith.constant 26 : i32
    %16 = vector.broadcast %c26_i32 : i32 to vector<4x128xi32>
    %17 = arith.cmpi sge, %15, %16 : vector<4x128xi32>
    %c142_i32 = arith.constant 142 : i32
    %18 = vector.broadcast %c142_i32 : i32 to vector<4x128xi32>
    %19 = arith.cmpi slt, %15, %18 : vector<4x128xi32>
    %20 = arith.andi %17, %19 : vector<4x128xi1>
    %cst_6 = arith.constant 0xFF800000 : f32
    %21 = vector.broadcast %cst_6 : f32 to vector<4x128xf32>
    %22 = arith.select %20, %12, %21 : vector<4x128xi1>, vector<4x128xf32>
    %cst_7 = arith.constant dense<0xFF800000> : vector<4xf32>
    %23 = vector.multi_reduction <maximumf>, %22, %cst_7 [1] : vector<4x128xf32> to vector<4xf32>
    %24 = vector.shape_cast %23 : vector<4xf32> to vector<4x1xf32>
    %25 = vector.broadcast %24 : vector<4x1xf32> to vector<4x128xf32>
    %26 = arith.cmpf oeq, %22, %25 : vector<4x128xf32>
    %c146_i32 = arith.constant 146 : i32
    %27 = vector.broadcast %c146_i32 : i32 to vector<4x128xi32>
    %28 = arith.select %26, %15, %27 : vector<4x128xi1>, vector<4x128xi32>
    %cst_8 = arith.constant dense<2147483647> : vector<4xi32>
    %29 = vector.multi_reduction <minsi>, %28, %cst_8 [1] : vector<4x128xi32> to vector<4xi32>
    %30 = vector.shape_cast %29 : vector<4xi32> to vector<4x1xi32>
    %c4_i32 = arith.constant 4 : i32
    %31 = vector.broadcast %c4_i32 : i32 to vector<4x1xi32>
    %32 = arith.subi %30, %31 : vector<4x1xi32>
    %33 = vector.broadcast %32 : vector<4x1xi32> to vector<4x128xi32>
    %34 = arith.cmpi sge, %15, %33 : vector<4x128xi32>
    %c4_i32_9 = arith.constant 4 : i32
    %35 = vector.broadcast %c4_i32_9 : i32 to vector<4x1xi32>
    %36 = arith.addi %30, %35 : vector<4x1xi32>
    %37 = vector.broadcast %36 : vector<4x1xi32> to vector<4x128xi32>
    %38 = arith.cmpi slt, %15, %37 : vector<4x128xi32>
    %39 = arith.andi %34, %38 : vector<4x128xi1>
    %cst_10 = arith.constant dense<true> : vector<4x128xi1>
    %40 = arith.xori %39, %cst_10 : vector<4x128xi1>
    %41 = arith.andi %20, %40 : vector<4x128xi1>
    %cst_11 = arith.constant 0.000000e+00 : f32
    %42 = vector.broadcast %cst_11 : f32 to vector<4x128xf32>
    %43 = arith.select %39, %9, %42 : vector<4x128xi1>, vector<4x128xf32>
    %cst_12 = arith.constant dense<0.000000e+00> : vector<4xf32>
    %44 = vector.multi_reduction <add>, %43, %cst_12 [1] : vector<4x128xf32> to vector<4xf32>
    %45 = vector.shape_cast %44 : vector<4xf32> to vector<4x1xf32>
    %cst_13 = arith.constant 0.000000e+00 : f32
    %46 = vector.broadcast %cst_13 : f32 to vector<4x128xf32>
    %47 = arith.select %41, %9, %46 : vector<4x128xi1>, vector<4x128xf32>
    %cst_14 = arith.constant dense<0.000000e+00> : vector<4xf32>
    %48 = vector.multi_reduction <add>, %47, %cst_14 [1] : vector<4x128xf32> to vector<4xf32>
    %49 = vector.shape_cast %48 : vector<4xf32> to vector<4x1xf32>
    %50 = math.log %45 : vector<4x1xf32>
    %cst_15 = arith.constant 1.000000e-07 : f32
    %51 = vector.broadcast %cst_15 : f32 to vector<4x1xf32>
    %52 = arith.addf %49, %51 : vector<4x1xf32>
    %53 = math.log %52 : vector<4x1xf32>
    %54 = arith.subf %50, %53 : vector<4x1xf32>
    %cst_16 = arith.constant -4.34294462 : f32
    %55 = vector.broadcast %cst_16 : f32 to vector<4x1xf32>
    %56 = arith.mulf %55, %54 : vector<4x1xf32>
    %c4_i32_17 = arith.constant 4 : i32
    %57 = arith.muli %arg0, %c4_i32_17 : i32
    %58 = tpu.iota {dimensions = array<i32: 0>} : vector<4x1xi32>
    %59 = vector.broadcast %57 : i32 to vector<4x1xi32>
    %60 = arith.addi %59, %58 : vector<4x1xi32>
    %c4_i32_18 = arith.constant 4 : i32
    %61 = vector.broadcast %c4_i32_18 : i32 to vector<4x1xi32>
    %62 = arith.cmpi slt, %60, %61 : vector<4x1xi32>
    %cst_19 = arith.constant 0.000000e+00 : f32
    %63 = vector.broadcast %cst_19 : f32 to vector<4x1xf32>
    %64 = arith.select %62, %56, %63 : vector<4x1xi1>, vector<4x1xf32>
    %c0_20 = arith.constant 0 : index
    %c0_21 = arith.constant 0 : index
    %65 = vector.load %arg4[%c0_20, %c0_21] : memref<4x1xf32, #tpu.memory_space<vmem>>, vector<4x1xf32>
    tpu.vector_store %arg4[%c0_20, %c0_21], %64 {strides = array<i32>} : memref<4x1xf32, #tpu.memory_space<vmem>>, vector<4x1xf32>,
    return
  }
  func.func @transform_0(%arg0: i32) -> (i32, i32) {
    %c0_i32 = arith.constant 0 : i32
    %c0_i32_0 = arith.constant 0 : i32
    return %arg0, %c0_i32 : i32, i32
  }
  func.func @transform_1(%arg0: i32) -> (i32, i32) {
    %c0_i32 = arith.constant 0 : i32
    %c0_i32_0 = arith.constant 0 : i32
    return %arg0, %c0_i32 : i32, i32
  }
  func.func @transform_2(%arg0: i32) -> (i32, i32) {
    %c0_i32 = arith.constant 0 : i32
    %c0_i32_0 = arith.constant 0 : i32
    %c0_i32_1 = arith.constant 0 : i32
    return %c0_i32, %c0_i32_0 : i32, i32
  }
  func.func @transform_3(%arg0: i32) -> (i32, i32) {
    %c0_i32 = arith.constant 0 : i32
    %c0_i32_0 = arith.constant 0 : i32
    return %arg0, %c0_i32 : i32, i32
  }
}

</mosaic_0001>

<bundles_post_ra>
// kernel: tpu_custom_call.1
= control target key start
LH: loop header
LB: loop body
LE: loop exit
PB: predicated region body
PF: predicated region fallthrough
CT: control target
= control target key end

     0   :  { %8 = vsyncpa [#allocation3], 0  ;;  %s379_s0 = inlined_call_operand.hbm [shape: f32[4,128], index: 0, kind: input, shape index: {}]   ;;  %s380_s1 = inlined_call_operand.hbm [shape: f32[4,128], index: 1, kind: input, shape index: {}]   ;;  %s381_s2 = inlined_call_operand.hbm [shape: f32[128,256], index: 2, kind: input, shape index: {}]   ;;  %s382_s3 = inlined_call_operand.vmem [shape: f32[4,1], index: 3, kind: output, shape index: {}]  }
   0x1   :  { %9 = vsyncpa [#allocation5], 0  ;;  %s26_s14 = sshll.u32 %s380_s1, 4  ;;  %s329_s15 = smov [#allocation4]   ;;  %s27_s14 = int_to_ptr.hbm [resolvable:$true] %s26_s14 }
   0x2   :  { %s28_s16 = sshll.u32 %s329_s15, 4  ;;  %s15_s19 = sshll.u32 %s379_s0, 4  ;;  %s29_s16 = int_to_ptr.vmem [resolvable:$true] %s28_s16  ;;  %s16_s19 = int_to_ptr.hbm [resolvable:$true] %s15_s19 }
   0x3   :  { %31 = dma.hbm_to_vmem [thread:$0]  %s27_s14, 64, %s29_s16, [#allocation5]  }
   0x4   :  { %s330_s20 = smov [#allocation2]   ;;  %s36_s24 = sshll.u32 %s381_s2, 4  ;;  %s37_s24 = int_to_ptr.hbm [resolvable:$true] %s36_s24 }
   0x5   :  { %s17_s21 = sshll.u32 %s330_s20, 4  ;;  %s331_s1 = smov [#allocation6]   ;;  %s18_s21 = int_to_ptr.vmem [resolvable:$true] %s17_s21 }
   0x6   :  { %20 = dma.hbm_to_vmem [thread:$0]  %s16_s19, 64, %s18_s21, [#allocation3]  }
   0x7   :  { %s38_s25 = sshll.u32 %s331_s1, 4  ;;  %s332_s26 = smov 256   ;;  %s39_s25 = int_to_ptr.vmem [resolvable:$true] %s38_s25 }
   0x8   :  { %s333_s27 = smov 16  }
   0x9   :  { %44 = dma.hbm_to_vmem [thread:$0]  %s37_s24, 4096, %s39_s25, [#allocation5], %s332_s26, %s332_s26, %s333_s27  }
   0xa   :  { %325 = dma.done.wait [#allocation3], 64  }
   0xb   :  { %326 = vsyncadd [#allocation3], 4294967232 }
   0xc   :  { %327 = dma.done.wait [#allocation5], 4160  }
   0xd   :  { %328 = vsyncadd [#allocation5], 4294963136  ;;  %v87_v0 = vld [vmem:[#allocation6 + $0xf0] sm:$0xff]  ;;  %v88_v1 = vld [vmem:[#allocation6 + $0xf8] sm:$0xff]  ;;  %v177_v33 = vlaneseq  ;;  %vm184_vm3 = vcmask 1043456   ;;  %vm334_vm9 = vmmov 1  }
   0xe   :  { %v85_v2 = vld [vmem:[#allocation6 + $0xe0] sm:$0xff]  ;;  %131 = vmatpush.msra.mxu2 %v87_v0  ;;  %151 = vmatpush.msra.mxu3 %v88_v1  ;;  %v86_v3 = vld [vmem:[#allocation6 + $0xe8] sm:$0xff]  ;;  %v83_v4 = vld [vmem:[#allocation6 + $0xd0] sm:$0xff]  ;;  %vm234_vm13 = vcmask 3072  }
   0xf   :  { %v84_v5 = vld [vmem:[#allocation6 + $0xd8] sm:$0xff]  ;;  %90 = vmatpush.msra.mxu0 %v87_v0  ;;  %110 = vmatpush.msra.mxu1 %v88_v1  ;;  %v81_v6 = vld [vmem:[#allocation6 + $0xc0] sm:$0xff]  ;;  %v82_v7 = vld [vmem:[#allocation6 + $0xc8] sm:$0xff]  ;;  %v178_v34 = vand.u32 127, %v177_v33 }
  0x10   :  { %132 = vmatpush.msra.mxu2 %v85_v2  ;;  %152 = vmatpush.msra.mxu3 %v86_v3  ;;  %v79_v8 = vld [vmem:[#allocation6 + $0xb0] sm:$0xff]  ;;  %v80_v9 = vld [vmem:[#allocation6 + $0xb8] sm:$0xff]  ;;  %v77_v10 = vld [vmem:[#allocation6 + $0xa0] sm:$0xff] }
  0x11   :  { %91 = vmatpush.msra.mxu0 %v85_v2  ;;  %111 = vmatpush.msra.mxu1 %v86_v3  ;;  %v78_v11 = vld [vmem:[#allocation6 + $0xa8] sm:$0xff]  ;;  %v75_v12 = vld [vmem:[#allocation6 + $0x90] sm:$0xff]  ;;  %v76_v13 = vld [vmem:[#allocation6 + $0x98] sm:$0xff]  ;;  %v179_v35 = vadd.s32 18, %v178_v34 }
  0x12   :  { %133 = vmatpush.msra.mxu2 %v83_v4  ;;  %153 = vmatpush.msra.mxu3 %v84_v5  ;;  %v73_v14 = vld [vmem:[#allocation6 + $0x80] sm:$0xff]  ;;  %v74_v15 = vld [vmem:[#allocation6 + $0x88] sm:$0xff]  ;;  %v71_v16 = vld [vmem:[#allocation6 + $0x70] sm:$0xff] }
  0x13   :  { %92 = vmatpush.msra.mxu0 %v83_v4  ;;  %112 = vmatpush.msra.mxu1 %v84_v5  ;;  %v72_v17 = vld [vmem:[#allocation6 + $0x78] sm:$0xff]  ;;  %v69_v18 = vld [vmem:[#allocation6 + $0x60] sm:$0xff]  ;;  %v70_v19 = vld [vmem:[#allocation6 + $0x68] sm:$0xff]  ;;  %vm180_vm0 = vcmp.ge.s32.totalorder %v179_v35, 26  ;;  %vm181_vm1 = vcmp.lt.s32.totalorder %v179_v35, 142 }
  0x14   :  { %134 = vmatpush.msra.mxu2 %v81_v6  ;;  %154 = vmatpush.msra.mxu3 %v82_v7  ;;  %v67_v20 = vld [vmem:[#allocation6 + $0x50] sm:$0xff]  ;;  %v68_v21 = vld [vmem:[#allocation6 + $0x58] sm:$0xff]  ;;  %v65_v22 = vld [vmem:[#allocation6 + $0x40] sm:$0xff] }
  0x15   :  { %93 = vmatpush.msra.mxu0 %v81_v6  ;;  %113 = vmatpush.msra.mxu1 %v82_v7  ;;  %v66_v23 = vld [vmem:[#allocation6 + $0x48] sm:$0xff]  ;;  %v63_v24 = vld [vmem:[#allocation6 + $0x30] sm:$0xff]  ;;  %v64_v25 = vld [vmem:[#allocation6 + $0x38] sm:$0xff] }
  0x16   :  { %135 = vmatpush.msra.mxu2 %v79_v8  ;;  %155 = vmatpush.msra.mxu3 %v80_v9  ;;  %v61_v26 = vld [vmem:[#allocation6 + $0x20] sm:$0xff]  ;;  %v62_v27 = vld [vmem:[#allocation6 + $0x28] sm:$0xff]  ;;  %v59_v28 = vld [vmem:[#allocation6 + $0x10] sm:$0xff] }
  0x17   :  { %94 = vmatpush.msra.mxu0 %v79_v8  ;;  %114 = vmatpush.msra.mxu1 %v80_v9  ;;  %v60_v29 = vld [vmem:[#allocation6 + $0x18] sm:$0xff]  ;;  %v57_v30 = vld [vmem:[#allocation6] sm:$0xff]  ;;  %v58_v31 = vld [vmem:[#allocation6 + $0x8] sm:$0xff] }
  0x18   :  { %136 = vmatpush.msra.mxu2 %v77_v10  ;;  %156 = vmatpush.msra.mxu3 %v78_v11  ;;  %v130_v32 = vld [vmem:[#allocation4] sm:$0xf]  ;;  %vm364_vm2 = vmand %vm180_vm0, %vm181_vm1  ;;  %v89_v44 = vld [vmem:[#allocation2] sm:$0xf] }
  0x19   :  { %95 = vmatpush.msra.mxu0 %v77_v10  ;;  %115 = vmatpush.msra.mxu1 %v78_v11  ;;  %v229_v11 = vshrl.u32 %v177_v33, 7 }
  0x1a   :  { %137 = vmatpush.msra.mxu2 %v75_v12  ;;  %157 = vmatpush.msra.mxu3 %v76_v13 }
  0x1b   :  { %96 = vmatpush.msra.mxu0 %v75_v12  ;;  %116 = vmatpush.msra.mxu1 %v76_v13  ;;  %vm232_vm12 = vcmp.lt.s32.totalorder %v229_v11, 4 }
  0x1c   :  { %138 = vmatpush.msra.mxu2 %v73_v14  ;;  %158 = vmatpush.msra.mxu3 %v74_v15 }
  0x1d   :  { %97 = vmatpush.msra.mxu0 %v73_v14  ;;  %117 = vmatpush.msra.mxu1 %v74_v15 }
  0x1e   :  { %139 = vmatpush.msra.mxu2 %v71_v16  ;;  %159 = vmatpush.msra.mxu3 %v72_v17 }
  0x1f   :  { %98 = vmatpush.msra.mxu0 %v71_v16  ;;  %118 = vmatpush.msra.mxu1 %v72_v17 }
  0x20   :  { %140 = vmatpush.msra.mxu2 %v69_v18  ;;  %160 = vmatpush.msra.mxu3 %v70_v19 }
  0x21   :  { %99 = vmatpush.msra.mxu0 %v69_v18  ;;  %119 = vmatpush.msra.mxu1 %v70_v19 }
  0x22   :  { %141 = vmatpush.msra.mxu2 %v67_v20  ;;  %161 = vmatpush.msra.mxu3 %v68_v21 }
  0x23   :  { %100 = vmatpush.msra.mxu0 %v67_v20  ;;  %120 = vmatpush.msra.mxu1 %v68_v21 }
  0x24   :  { %142 = vmatpush.msra.mxu2 %v65_v22  ;;  %162 = vmatpush.msra.mxu3 %v66_v23 }
  0x25   :  { %101 = vmatpush.msra.mxu0 %v65_v22  ;;  %121 = vmatpush.msra.mxu1 %v66_v23 }
  0x26   :  { %143 = vmatpush.msra.mxu2 %v63_v24  ;;  %163 = vmatpush.msra.mxu3 %v64_v25 }
  0x27   :  { %102 = vmatpush.msra.mxu0 %v63_v24  ;;  %122 = vmatpush.msra.mxu1 %v64_v25 }
  0x28   :  { %144 = vmatpush.msra.mxu2 %v61_v26  ;;  %164 = vmatpush.msra.mxu3 %v62_v27 }
  0x29   :  { %103 = vmatpush.msra.mxu0 %v61_v26  ;;  %123 = vmatpush.msra.mxu1 %v62_v27 }
  0x2a   :  { %145 = vmatpush.msra.mxu2 %v59_v28  ;;  %165 = vmatpush.msra.mxu3 %v60_v29 }
  0x2b   :  { %104 = vmatpush.msra.mxu0 %v59_v28  ;;  %124 = vmatpush.msra.mxu1 %v60_v29 }
  0x2c   :  { %146 = vmatpush.msra.mxu2 %v57_v30  ;;  %166 = vmatpush.msra.mxu3 %v58_v31 }
  0x2d   :  { %147 = vmatmul.f32.vlgmr.msra.gmra.mxu2 %v130_v32  ;;  %167 = vmatmul.f32.vlgmr.msra.gmra.mxu3 %v130_v32 }
  0x2e   :  { %105 = vmatpush.msra.mxu0 %v57_v30  ;;  %125 = vmatpush.msra.mxu1 %v58_v31 }
  0x2f   :  { %106 = vmatmul.f32.vlgmr.msra.gmra.mxu0 %v89_v44  ;;  %126 = vmatmul.f32.vlgmr.msra.gmra.mxu1 %v89_v44 }
  0xac   :  { %v107_v55 = vpop.f32.mrf.mxu0  ;;  %v127_v56 = vpop.f32.mrf.mxu1 }
  0xad   :  { %v171_v60 = vmul.f32 %v107_v55, %v107_v55  ;;  %v172_v61 = vmul.f32 %v127_v56, %v127_v56 }
  0xaf   :  { %v175_v1 = vadd.f32 %v172_v61, %v171_v60 }
  0xb0   :  { %v148_v36 = vpop.f32.mrf.mxu2  ;;  %v168_v37 = vpop.f32.mrf.mxu3 }
  0xb1   :  { %v173_v38 = vmul.f32 %v148_v36, %v148_v36  ;;  %v174_v39 = vmul.f32 %v168_v37, %v168_v37 }
  0xb3   :  { %v176_v41 = vadd.f32 %v174_v39, %v173_v38 }
  0xb5   :  { %v183_v42 = vsel %vm364_vm2, %v176_v41, -inf }
  0xb6   :  { %v185_v43 = vsel %vm184_vm3, %v183_v42, -inf }
  0xb7   :  { %186 = vmax.xlane.f32.xlu0 %v185_v43 }
 0x12a   :  { %v187_v45 = vpop.xlane.xlu0 %186 }
 0x12b   :  { %vm188_vm4 = vcmp.eq.f32.partialorder %v183_v42, %v187_v45 }
 0x12c   :  { %v189_v46 = vsel %vm188_vm4, %v179_v35, 146 }
 0x12d   :  { %v190_v47 = vsel %vm184_vm3, %v189_v46, 2147483647 }
 0x12e   :  { %v192_v48 = vshra.s32 %v190_v47, 16  ;;  %v191_v50 = vand.u32 65535, %v190_v47 }
 0x130   :  { %v194_v49 = vcvt.s32.f32 %v192_v48  ;;  %v193_v52 = vcvt.s32.f32 %v191_v50 }
 0x132   :  { %195 = vmin.xlane.f32.xlu0 %v194_v49 }
 0x1a5   :  { %v196_v51 = vpop.xlane.xlu0 %195 }
 0x1a6   :  { %vm197_vm5 = vcmp.eq.f32.partialorder %v194_v49, %v196_v51  ;;  %v202_v54 = vcvt.f32.s32 %v196_v51 }
 0x1a7   :  { %v198_v53 = vsel %vm197_vm5, %v193_v52, inf }
 0x1a8   :  { %199 = vmin.xlane.f32.xlu1 %v198_v53  ;;  %v203_v58 = vshll.u32 %v202_v54, 16 }
 0x21b   :  { %v200_v57 = vpop.xlane.xlu1 %199 }
 0x21c   :  { %v201_v59 = vcvt.f32.s32 %v200_v57 }
 0x21e   :  { %v204_v62 = vadd.s32 %v203_v58, %v201_v59 }
 0x220   :  { %v242_v63 = vadd.s32 4294967292, %v204_v62  ;;  %v207_v0 = vadd.s32 4, %v204_v62 }
 0x222   :  { %vm206_vm6 = vcmp.ge.s32.totalorder %v179_v35, %v242_v63  ;;  %vm208_vm7 = vcmp.lt.s32.totalorder %v179_v35, %v207_v0 }
 0x223   :  { %vm209_vm8 = vmand %vm206_vm6, %vm208_vm7 }
 0x224   :  { %vm210_vm10 = vmxor %vm209_vm8, %vm334_vm9  ;;  %v212_v2 = vsel %vm209_vm8, %v175_v1, 0.0 }
 0x225   :  { %v213_v3 = vsel %vm184_vm3, %v212_v2, 0.0  ;;  %vm211_vm11 = vmand %vm364_vm2, %vm210_vm10 }
 0x226   :  { %214 = vadd.xlane.f32.xlu2 %v213_v3  ;;  %v216_v4 = vsel %vm211_vm11, %v175_v1, 0.0 }
 0x227   :  { %v217_v5 = vsel %vm184_vm3, %v216_v4, 0.0 }
 0x228   :  { %218 = vadd.xlane.f32.xlu1 %v217_v5 }
 0x299   :  { %v215_v6 = vpop.xlane.xlu2 %214 }
 0x29a   :  { %249 = vlog2.f32 %v215_v6 }
 0x29b   :  { %v219_v7 = vpop.xlane.xlu1 %218 }
 0x29c   :  { %v222_v8 = vadd.f32 1e-07, %v219_v7 }
 0x29e   :  { %251 = vlog2.f32 %v222_v8 }
 0x2a0   :  { %v250_v9 = vpop.eup %249 }
 0x2a1   :  { %v221_v12 = vmul.f32 0.6931472, %v250_v9 }
 0x2a4   :  { %v252_v10 = vpop.eup %251 }
 0x2a5   :  { %v224_v13 = vmul.f32 0.6931472, %v252_v10 }
 0x2a7   :  { %v225_v14 = vsub.f32 %v221_v12, %v224_v13 }
 0x2a9   :  { %v226_v15 = vmul.f32 -4.3429446, %v225_v14 }
 0x2ab   :  { %v233_v16 = vsel %vm232_vm12, %v226_v15, 0.0 }
 0x2ac   :  { %235 = vst.msk [vmem:[%s382_s3] sm:$0xf] %vm234_vm13, %v233_v16 }
 0x2ad   :  { %240 = vsyncpa [#allocation3], 1 }
 0x2ae   :  { %241 = vsyncpa [#allocation5], 1 }

</bundles_post_ra>
